<compile_context>
chip_gen: v5e
topology: v5e:2x2
jax: 0.10.0
libtpu: 0.0.40
codegen_flags: <defaults>
</compile_context>

<pallas_src>
import jax
import jax.numpy as jnp
from jax.experimental import pallas as pl
from jax.experimental.pallas import tpu as pltpu


def _autoencoder_kernel(x_ref,
                        w1, w2, w3,          # encoder weights (bf16)
                        w4, w5, w6,          # decoder weights (bf16)
                        b_ref,               # packed biases (6, 128) f32, zero-padded
                        out_ref):
    """Whole autoencoder forward for one (TB, input_dim) batch tile."""

    def layer(h_bf16, w_ref, bias_row, relu):
        n_out = w_ref.shape[1]
        acc = jnp.dot(h_bf16, w_ref[...], preferred_element_type=jnp.float32)
        acc = acc + b_ref[bias_row:bias_row + 1, :n_out]      # f32 bias add
        if relu:
            acc = jnp.maximum(acc, 0.0)                        # ReLU (Dropout = identity)
        return acc

    h = x_ref[...]                                             # bf16 (TB, input_dim)

    # ----- encoder -----
    h = layer(h, w1, 0, True).astype(jnp.bfloat16)
    h = layer(h, w2, 1, True).astype(jnp.bfloat16)
    h = layer(h, w3, 2, True).astype(jnp.bfloat16)             # encoded (TB, 32)

    # ----- decoder -----
    h = layer(h, w4, 3, True).astype(jnp.bfloat16)
    h = layer(h, w5, 4, True).astype(jnp.bfloat16)
    h = layer(h, w6, 5, False)                                 # no final ReLU, stays f32

    out_ref[...] = h.astype(out_ref.dtype)


def anomaly_detector_forward(x, params, *, tb=256):
    """x: (batch, input_dim) float32.  params: list of (W, b) for the 6 Linear layers.

    Weights are stored as (in_features, out_features) so the kernel computes
    y = x @ W + b (== PyTorch's x @ W_pt.T + b with W = W_pt.T).
    """
    batch, input_dim = x.shape

    # Batch tile: multiple of 8 sublanes, capped to the (padded) batch.
    tb = min(tb, max(8, -(-batch // 8) * 8))
    tb = max(8, (tb // 8) * 8)
    padded = pl.cdiv(batch, tb) * tb
    if padded != batch:
        x = jnp.pad(x, ((0, padded - batch), (0, 0)))

    # bf16 operands for the MXU; f32 accumulation happens in-kernel.
    x_bf = x.astype(jnp.bfloat16)
    ws = [w.astype(jnp.bfloat16) for w, _ in params]

    # Pack the six biases into one zero-padded (6, bias_width) f32 buffer.
    bias_width = max(128, input_dim)
    b_pack = jnp.zeros((len(params), bias_width), jnp.float32)
    for i, (_, b) in enumerate(params):
        b_pack = b_pack.at[i, :b.shape[0]].set(b)

    grid = (padded // tb,)
    x_spec = pl.BlockSpec((tb, input_dim), lambda i: (i, 0))
    out_spec = pl.BlockSpec((tb, input_dim), lambda i: (i, 0))
    # Weights / biases: full-array blocks, constant index_map -> resident across steps.
    w_specs = [pl.BlockSpec(w.shape, lambda i: (0, 0)) for w in ws]
    b_spec = pl.BlockSpec(b_pack.shape, lambda i: (0, 0))

    out = pl.pallas_call(
        _autoencoder_kernel,
        out_shape=jax.ShapeDtypeStruct((padded, input_dim), jnp.float32),
        grid=grid,
        in_specs=[x_spec] + w_specs + [b_spec],
        out_specs=out_spec,
        compiler_params=pltpu.CompilerParams(
            dimension_semantics=("parallel",),      # shard batch tiles across TCs (v7x)
            vmem_limit_bytes=48 * 1024 * 1024,      # explicit cap (v7x VMEM is smaller)
        ),
    )(x_bf, *ws, b_pack)

    return out[:batch]


def init_params(input_dim, key):
    """Deterministic init of the 6 Linear layers (shapes from the PyTorch __init__)."""
    dims = [(input_dim, 128), (128, 64), (64, 32),      # encoder
            (32, 64), (64, 128), (128, input_dim)]      # decoder
    params = []
    for d_in, d_out in dims:
        kw, kb, key = jax.random.split(key, 3)
        # PyTorch Linear default: U(-1/sqrt(fan_in), 1/sqrt(fan_in))
        bound = 1.0 / jnp.sqrt(jnp.float32(d_in))
        w = jax.random.uniform(kw, (d_in, d_out), jnp.float32, -bound, bound)
        b = jax.random.uniform(kb, (d_out,), jnp.float32, -bound, bound)
        params.append((w, b))
    return params


def reference_forward(x, params):
    """Pure-JAX f32 reference for correctness checking (eval-mode forward)."""
    h = x
    for i, (w, b) in enumerate(params):
        h = h @ w + b
        if i != len(params) - 1:
            h = jnp.maximum(h, 0.0)
    return h


if __name__ == "__main__":
    key = jax.random.PRNGKey(0)
    batch, input_dim = 300, 64          # non-multiple batch exercises padding + grid>1

    kx, kp = jax.random.split(key)
    x = jax.random.normal(kx, (batch, input_dim), jnp.float32)
    params = init_params(input_dim, kp)

    out = anomaly_detector_forward(x, params, tb=128)   # grid = (3,)
    out = jax.block_until_ready(out)

    ref = reference_forward(x, params)
    assert out.shape == (batch, input_dim)
    # bf16 matmul operands (f32 accumulation) -> loosened tolerance vs pure-f32 reference.
    assert jnp.allclose(out, ref, atol=5e-2, rtol=5e-2), "mismatch vs reference"

    print("KERNEL_OK")
</pallas_src>

<mosaic_0001>
module attributes {stable_mosaic.version = 11 : i64} {
  func.func @_autoencoder_kernel(%arg0: i32, %arg1: memref<128x64xbf16, #tpu.memory_space<vmem>>, %arg2: memref<64x128xbf16, #tpu.memory_space<vmem>>, %arg3: memref<128x64xbf16, #tpu.memory_space<vmem>>, %arg4: memref<64x32xbf16, #tpu.memory_space<vmem>>, %arg5: memref<32x64xbf16, #tpu.memory_space<vmem>>, %arg6: memref<64x128xbf16, #tpu.memory_space<vmem>>, %arg7: memref<128x64xbf16, #tpu.memory_space<vmem>>, %arg8: memref<6x128xf32, #tpu.memory_space<vmem>>, %arg9: memref<128x64xf32, #tpu.memory_space<vmem>>) attributes {dimension_semantics = [#tpu.dimension_semantics<parallel>], iteration_bounds = array<i64: 3>, scalar_prefetch = 0 : i64, scratch_operands = 0 : i64, tpu.core_type = #tpu.core_type<tc>, window_params = [{transform_indices = @transform_0, window_bounds = array<i64: 128, 64>}, {pipeline_mode = #tpu.pipeline_mode<synchronous>, transform_indices = @transform_1, window_bounds = array<i64: 64, 128>}, {pipeline_mode = #tpu.pipeline_mode<synchronous>, transform_indices = @transform_2, window_bounds = array<i64: 128, 64>}, {pipeline_mode = #tpu.pipeline_mode<synchronous>, transform_indices = @transform_3, window_bounds = array<i64: 64, 32>}, {pipeline_mode = #tpu.pipeline_mode<synchronous>, transform_indices = @transform_4, window_bounds = array<i64: 32, 64>}, {pipeline_mode = #tpu.pipeline_mode<synchronous>, transform_indices = @transform_5, window_bounds = array<i64: 64, 128>}, {pipeline_mode = #tpu.pipeline_mode<synchronous>, transform_indices = @transform_6, window_bounds = array<i64: 128, 64>}, {pipeline_mode = #tpu.pipeline_mode<synchronous>, transform_indices = @transform_7, window_bounds = array<i64: 6, 128>}, {transform_indices = @transform_8, window_bounds = array<i64: 128, 64>}]} {
    %c0 = arith.constant 0 : index
    %c0_0 = arith.constant 0 : index
    %0 = vector.load %arg1[%c0, %c0_0] : memref<128x64xbf16, #tpu.memory_space<vmem>>, vector<128x64xbf16>
    %c0_1 = arith.constant 0 : index
    %c0_2 = arith.constant 0 : index
    %1 = vector.load %arg2[%c0_1, %c0_2] : memref<64x128xbf16, #tpu.memory_space<vmem>>, vector<64x128xbf16>
    %cst = arith.constant dense<0.000000e+00> : vector<128x128xf32>
    %2 = tpu.matmul %0, %1, %cst {dimension_numbers = #tpu.dot_dimension_numbers<[1], [0], [0], [1], [0, 0, 1, 1], [], []>} : vector<128x64xbf16>, vector<64x128xbf16>, vector<128x128xf32> -> vector<128x128xf32>
    %c0_3 = arith.constant 0 : index
    %c0_4 = arith.constant 0 : index
    %3 = vector.load %arg8[%c0_3, %c0_4] : memref<6x128xf32, #tpu.memory_space<vmem>>, vector<1x128xf32>
    %4 = vector.broadcast %3 : vector<1x128xf32> to vector<128x128xf32>
    %5 = arith.addf %2, %4 : vector<128x128xf32>
    %cst_5 = arith.constant 0.000000e+00 : f32
    %6 = vector.broadcast %cst_5 : f32 to vector<128x128xf32>
    %7 = arith.maximumf %5, %6 : vector<128x128xf32>
    %8 = arith.truncf %7 : vector<128x128xf32> to vector<128x128xbf16>
    %c0_6 = arith.constant 0 : index
    %c0_7 = arith.constant 0 : index
    %9 = vector.load %arg3[%c0_6, %c0_7] : memref<128x64xbf16, #tpu.memory_space<vmem>>, vector<128x64xbf16>
    %cst_8 = arith.constant dense<0.000000e+00> : vector<128x64xf32>
    %10 = tpu.matmul %8, %9, %cst_8 {dimension_numbers = #tpu.dot_dimension_numbers<[1], [0], [0], [1], [0, 0, 1, 1], [], []>} : vector<128x128xbf16>, vector<128x64xbf16>, vector<128x64xf32> -> vector<128x64xf32>
    %c1 = arith.constant 1 : index
    %c0_9 = arith.constant 0 : index
    %11 = vector.load %arg8[%c1, %c0_9] : memref<6x128xf32, #tpu.memory_space<vmem>>, vector<1x64xf32>
    %12 = vector.broadcast %11 : vector<1x64xf32> to vector<128x64xf32>
    %13 = arith.addf %10, %12 : vector<128x64xf32>
    %cst_10 = arith.constant 0.000000e+00 : f32
    %14 = vector.broadcast %cst_10 : f32 to vector<128x64xf32>
    %15 = arith.maximumf %13, %14 : vector<128x64xf32>
    %16 = arith.truncf %15 : vector<128x64xf32> to vector<128x64xbf16>
    %c0_11 = arith.constant 0 : index
    %c0_12 = arith.constant 0 : index
    %17 = vector.load %arg4[%c0_11, %c0_12] : memref<64x32xbf16, #tpu.memory_space<vmem>>, vector<64x32xbf16>
    %cst_13 = arith.constant dense<0.000000e+00> : vector<128x32xf32>
    %18 = tpu.matmul %16, %17, %cst_13 {dimension_numbers = #tpu.dot_dimension_numbers<[1], [0], [0], [1], [0, 0, 1, 1], [], []>} : vector<128x64xbf16>, vector<64x32xbf16>, vector<128x32xf32> -> vector<128x32xf32>
    %c2 = arith.constant 2 : index
    %c0_14 = arith.constant 0 : index
    %19 = vector.load %arg8[%c2, %c0_14] : memref<6x128xf32, #tpu.memory_space<vmem>>, vector<1x32xf32>
    %20 = vector.broadcast %19 : vector<1x32xf32> to vector<128x32xf32>
    %21 = arith.addf %18, %20 : vector<128x32xf32>
    %cst_15 = arith.constant 0.000000e+00 : f32
    %22 = vector.broadcast %cst_15 : f32 to vector<128x32xf32>
    %23 = arith.maximumf %21, %22 : vector<128x32xf32>
    %24 = arith.truncf %23 : vector<128x32xf32> to vector<128x32xbf16>
    %c0_16 = arith.constant 0 : index
    %c0_17 = arith.constant 0 : index
    %25 = vector.load %arg5[%c0_16, %c0_17] : memref<32x64xbf16, #tpu.memory_space<vmem>>, vector<32x64xbf16>
    %cst_18 = arith.constant dense<0.000000e+00> : vector<128x64xf32>
    %26 = tpu.matmul %24, %25, %cst_18 {dimension_numbers = #tpu.dot_dimension_numbers<[1], [0], [0], [1], [0, 0, 1, 1], [], []>} : vector<128x32xbf16>, vector<32x64xbf16>, vector<128x64xf32> -> vector<128x64xf32>
    %c3 = arith.constant 3 : index
    %c0_19 = arith.constant 0 : index
    %27 = vector.load %arg8[%c3, %c0_19] : memref<6x128xf32, #tpu.memory_space<vmem>>, vector<1x64xf32>
    %28 = vector.broadcast %27 : vector<1x64xf32> to vector<128x64xf32>
    %29 = arith.addf %26, %28 : vector<128x64xf32>
    %cst_20 = arith.constant 0.000000e+00 : f32
    %30 = vector.broadcast %cst_20 : f32 to vector<128x64xf32>
    %31 = arith.maximumf %29, %30 : vector<128x64xf32>
    %32 = arith.truncf %31 : vector<128x64xf32> to vector<128x64xbf16>
    %c0_21 = arith.constant 0 : index
    %c0_22 = arith.constant 0 : index
    %33 = vector.load %arg6[%c0_21, %c0_22] : memref<64x128xbf16, #tpu.memory_space<vmem>>, vector<64x128xbf16>
    %cst_23 = arith.constant dense<0.000000e+00> : vector<128x128xf32>
    %34 = tpu.matmul %32, %33, %cst_23 {dimension_numbers = #tpu.dot_dimension_numbers<[1], [0], [0], [1], [0, 0, 1, 1], [], []>} : vector<128x64xbf16>, vector<64x128xbf16>, vector<128x128xf32> -> vector<128x128xf32>
    %c4 = arith.constant 4 : index
    %c0_24 = arith.constant 0 : index
    %35 = vector.load %arg8[%c4, %c0_24] : memref<6x128xf32, #tpu.memory_space<vmem>>, vector<1x128xf32>
    %36 = vector.broadcast %35 : vector<1x128xf32> to vector<128x128xf32>
    %37 = arith.addf %34, %36 : vector<128x128xf32>
    %cst_25 = arith.constant 0.000000e+00 : f32
    %38 = vector.broadcast %cst_25 : f32 to vector<128x128xf32>
    %39 = arith.maximumf %37, %38 : vector<128x128xf32>
    %40 = arith.truncf %39 : vector<128x128xf32> to vector<128x128xbf16>
    %c0_26 = arith.constant 0 : index
    %c0_27 = arith.constant 0 : index
    %41 = vector.load %arg7[%c0_26, %c0_27] : memref<128x64xbf16, #tpu.memory_space<vmem>>, vector<128x64xbf16>
    %cst_28 = arith.constant dense<0.000000e+00> : vector<128x64xf32>
    %42 = tpu.matmul %40, %41, %cst_28 {dimension_numbers = #tpu.dot_dimension_numbers<[1], [0], [0], [1], [0, 0, 1, 1], [], []>} : vector<128x128xbf16>, vector<128x64xbf16>, vector<128x64xf32> -> vector<128x64xf32>
    %c5 = arith.constant 5 : index
    %c0_29 = arith.constant 0 : index
    %43 = vector.load %arg8[%c5, %c0_29] : memref<6x128xf32, #tpu.memory_space<vmem>>, vector<1x64xf32>
    %44 = vector.broadcast %43 : vector<1x64xf32> to vector<128x64xf32>
    %45 = arith.addf %42, %44 : vector<128x64xf32>
    %c0_30 = arith.constant 0 : index
    %c0_31 = arith.constant 0 : index
    %46 = vector.load %arg9[%c0_30, %c0_31] : memref<128x64xf32, #tpu.memory_space<vmem>>, vector<128x64xf32>
    tpu.vector_store %arg9[%c0_30, %c0_31], %45 {strides = array<i32>} : memref<128x64xf32, #tpu.memory_space<vmem>>, vector<128x64xf32>,
    return
  }
  func.func @transform_0(%arg0: i32) -> (i32, i32) {
    %c0_i32 = arith.constant 0 : i32
    %c0_i32_0 = arith.constant 0 : i32
    return %arg0, %c0_i32 : i32, i32
  }
  func.func @transform_1(%arg0: i32) -> (i32, i32) {
    %c0_i32 = arith.constant 0 : i32
    %c0_i32_0 = arith.constant 0 : i32
    %c0_i32_1 = arith.constant 0 : i32
    return %c0_i32, %c0_i32_0 : i32, i32
  }
  func.func @transform_2(%arg0: i32) -> (i32, i32) {
    %c0_i32 = arith.constant 0 : i32
    %c0_i32_0 = arith.constant 0 : i32
    %c0_i32_1 = arith.constant 0 : i32
    return %c0_i32, %c0_i32_0 : i32, i32
  }
  func.func @transform_3(%arg0: i32) -> (i32, i32) {
    %c0_i32 = arith.constant 0 : i32
    %c0_i32_0 = arith.constant 0 : i32
    %c0_i32_1 = arith.constant 0 : i32
    return %c0_i32, %c0_i32_0 : i32, i32
  }
  func.func @transform_4(%arg0: i32) -> (i32, i32) {
    %c0_i32 = arith.constant 0 : i32
    %c0_i32_0 = arith.constant 0 : i32
    %c0_i32_1 = arith.constant 0 : i32
    return %c0_i32, %c0_i32_0 : i32, i32
  }
  func.func @transform_5(%arg0: i32) -> (i32, i32) {
    %c0_i32 = arith.constant 0 : i32
    %c0_i32_0 = arith.constant 0 : i32
    %c0_i32_1 = arith.constant 0 : i32
    return %c0_i32, %c0_i32_0 : i32, i32
  }
  func.func @transform_6(%arg0: i32) -> (i32, i32) {
    %c0_i32 = arith.constant 0 : i32
    %c0_i32_0 = arith.constant 0 : i32
    %c0_i32_1 = arith.constant 0 : i32
    return %c0_i32, %c0_i32_0 : i32, i32
  }
  func.func @transform_7(%arg0: i32) -> (i32, i32) {
    %c0_i32 = arith.constant 0 : i32
    %c0_i32_0 = arith.constant 0 : i32
    %c0_i32_1 = arith.constant 0 : i32
    return %c0_i32, %c0_i32_0 : i32, i32
  }
  func.func @transform_8(%arg0: i32) -> (i32, i32) {
    %c0_i32 = arith.constant 0 : i32
    %c0_i32_0 = arith.constant 0 : i32
    return %arg0, %c0_i32 : i32, i32
  }
}

</mosaic_0001>

<bundles_post_ra>
// kernel: tpu_custom_call.1
= control target key start
LH: loop header
LB: loop body
LE: loop exit
PB: predicated region body
PF: predicated region fallthrough
CT: control target
= control target key end

     0   :  { %s1508_s27 = smov 0   ;;  %s1775_s0 = inlined_call_operand.vmem [shape: bf16[384,64], index: 0, kind: input, shape index: {}]   ;;  %s1776_s1 = inlined_call_operand.vmem [shape: bf16[64,128], index: 1, kind: input, shape index: {}]   ;;  %s1777_s2 = inlined_call_operand.vmem [shape: bf16[128,64], index: 2, kind: input, shape index: {}]   ;;  %s1778_s3 = inlined_call_operand.vmem [shape: bf16[64,32], index: 3, kind: input, shape index: {}]   ;;  %s1779_s4 = inlined_call_operand.vmem [shape: bf16[32,64], index: 4, kind: input, shape index: {}]   ;;  %s1780_s5 = inlined_call_operand.vmem [shape: bf16[64,128], index: 5, kind: input, shape index: {}]   ;;  %s1781_s6 = inlined_call_operand.vmem [shape: bf16[128,64], index: 6, kind: input, shape index: {}]   ;;  %s1782_s7 = inlined_call_operand.vmem [shape: f32[6,128], index: 7, kind: input, shape index: {}]   ;;  %s1783_s8 = inlined_call_operand.vmem [shape: f32[384,64], index: 8, kind: output, shape index: {}]  }
   0x1 LB: > { %s1202_s28 = sadd.s32 4294967295, %s1461_s27   ;;  %p1206_p0 = scmp.ge.s32.totalorder %s1461_s27, 1  ;;  %s1461_s27 = sphi %s1508_s27, %s18_s27  }
   0x2   : > { %p263_p1 = scmp.lt.s32.totalorder %s1461_s27, 4 }
   0x4   : > { %p264_p2 = pnand %p1206_p0, %p263_p1 }
   0x5   : > { %s1207_s9 = sshll.u32 (!%p264_p2), %s1202_s28, 4 }
   0x6   : > { %267 = sbr.rel (%p264_p2) target bundleno = 994 (0x3e2), region = 52  ;;  %p298_p3 = scmp.lt.s32.totalorder (!%p264_p2), %s1207_s9, 47 }
   0xb   : > { %v1408_v0 = vld [vmem:[%s1776_s1 + $0x18] sm:$0xff]  ;;  %v1407_v1 = vld [vmem:[%s1776_s1 + $0x10] sm:$0xff]  ;;  %s1785_s9 = smov (!%p298_p3, %s1207_s9), 47  ;;  %v1406_v2 = vld [vmem:[%s1776_s1 + $0x8] sm:$0xff]  ;;  %vm400_vm0 = vcmask 523264   ;;  %vm786_vm1 = vcmask 261120  }
   0xc   : > { %429 = vmatpush.bf16.msra.mxu0 %v1408_v0  ;;  %1435 = vmatpush.bf16.msra.mxu2 %v1408_v0  ;;  %s1208_s14 = sshll.u32 %s1785_s9, 2  ;;  %v1405_v3 = vld [vmem:[%s1776_s1] sm:$0xff]  ;;  %v1416_v8 = vld [vmem:[%s1777_s2 + $0x38] sm:$0xff]  ;;  %v1415_v9 = vld [vmem:[%s1777_s2 + $0x30] sm:$0xff]  ;;  %s1210_s22 = sshll.u32 %s1785_s9, 3 }
   0xd   : > { %s301_s19 = scalar_lea.vmem %s1775_s0, %s1208_s14  ;;  %564 = vmatpush.bf16.msra.mxu1 %v1416_v8  ;;  %v1414_v10 = vld [vmem:[%s1777_s2 + $0x28] sm:$0xff]  ;;  %v1413_v12 = vld [vmem:[%s1777_s2 + $0x20] sm:$0xff]  ;;  %v1412_v16 = vld [vmem:[%s1777_s2 + $0x18] sm:$0xff]  ;;  %s1738_s28 = scalar_lea.vmem %s1783_s8, %s1210_s22 }
   0xe   : > { %v1397_v4 = vld [vmem:[%s301_s19] sm:$0xff]  ;;  %v1398_v5 = vld [vmem:[%s301_s19 + $0x8] sm:$0xff]  ;;  %v1399_v6 = vld [vmem:[%s301_s19 + $0x10] sm:$0xff] }
   0xf   : > { %v1402_v7 = vld [vmem:[%s301_s19 + $0x28] sm:$0xff]  ;;  %v1400_v11 = vld [vmem:[%s301_s19 + $0x18] sm:$0xff]  ;;  %v1403_v13 = vld [vmem:[%s301_s19 + $0x30] sm:$0xff] }
  0x10   : > { %430 = vmatpush.bf16.msra.mxu0 %v1407_v1  ;;  %1436 = vmatpush.bf16.msra.mxu2 %v1407_v1  ;;  %v1401_v14 = vld [vmem:[%s301_s19 + $0x20] sm:$0xff]  ;;  %v1404_v15 = vld [vmem:[%s301_s19 + $0x38] sm:$0xff]  ;;  %v1411_v17 = vld [vmem:[%s1777_s2 + $0x10] sm:$0xff] }
  0x11   : > { %565 = vmatpush.bf16.msra.mxu1 %v1415_v9  ;;  %v1410_v18 = vld [vmem:[%s1777_s2 + $0x8] sm:$0xff]  ;;  %v1409_v19 = vld [vmem:[%s1777_s2] sm:$0xff]  ;;  %v1420_v49 = vld [vmem:[%s1778_s3 + $0x18] sm:$0xff] }
  0x12   : > { %v1569_v21 = vld [vmem:[%s1782_s7] ss:$0 sm:$0xff]  ;;  %v1419_v59 = vld [vmem:[%s1778_s3 + $0x10] sm:$0xff] }
  0x14   : > { %431 = vmatpush.bf16.msra.mxu0 %v1406_v2  ;;  %1437 = vmatpush.bf16.msra.mxu2 %v1406_v2 }
  0x15   : > { %566 = vmatpush.bf16.msra.mxu1 %v1414_v10  ;;  %v1417_v10 = vld [vmem:[%s1778_s3] sm:$0xff] }
  0x18   : > { %432 = vmatpush.bf16.msra.mxu0 %v1405_v3  ;;  %1438 = vmatpush.bf16.msra.mxu2 %v1405_v3  ;;  %v1418_v3 = vld [vmem:[%s1778_s3 + $0x8] sm:$0xff] }
  0x19   : > { %567 = vmatpush.bf16.msra.mxu1 %v1413_v12 }
  0x1b   : > { %1259 = vmatmul.msk.bf16.vlgmr.msra.gmra.mxu0 %vm400_vm0, %v1397_v4  ;;  %1264 = vmatmul.msk.bf16.vlgmr.msra.gmra.mxu2 %vm400_vm0, %v1402_v7 }
  0x1c   : > { %699 = vmatpush.bf16.msrb.mxu2 %v1420_v49 }
  0x1d   : > { %568 = vmatpush.bf16.msra.mxu1 %v1412_v16 }
  0x20   : > { %700 = vmatpush.bf16.msrb.mxu2 %v1419_v59 }
  0x21   : > { %569 = vmatpush.bf16.msra.mxu1 %v1411_v17 }
  0x24   : > { %701 = vmatpush.bf16.msrb.mxu2 %v1418_v3 }
  0x25   : > { %570 = vmatpush.bf16.msra.mxu1 %v1410_v18  ;;  %v1602_v18 = vld [vmem:[%s1782_s7 + $0x1] ss:$0 sm:$0xff] }
  0x28   : > { %702 = vmatpush.bf16.msrb.mxu2 %v1417_v10 }
  0x29   : > { %571 = vmatpush.bf16.msra.mxu1 %v1409_v19  ;;  %v1422_v19 = vld [vmem:[%s1779_s4 + $0x8] sm:$0xff] }
  0x2a   : > { %1439 = vmatpush.bf16.msra.mxu3 %v1422_v19 }
  0x2b   : > { %1260 = vmatmul.msk.bf16.gmra.mxu0 %vm400_vm0, %v1398_v5  ;;  %1265 = vmatmul.msk.bf16.gmra.mxu2 %vm400_vm0, %v1403_v13 }
  0x2d   : > { %817 = vmatpush.bf16.msrb.mxu1 %v1422_v19 }
  0x3b   : > { %1261 = vmatmul.msk.bf16.gmra.mxu0 %vm400_vm0, %v1399_v6  ;;  %1266 = vmatmul.msk.bf16.gmra.mxu2 %vm400_vm0, %v1404_v15 }
  0x4b   : > { %1262 = vmatmul.msk.bf16.gmra.mxu0 %vm400_vm0, %v1400_v11 }
  0x5b   : > { %1263 = vmatmul.msk.bf16.gmra.mxu0 %vm400_vm0, %v1401_v14 }
  0x98   : > { %v434_v20 = vpop.f32.mrf.mxu0 }
  0x99   : > { %v435_v22 = vadd.f32 %v1569_v21, %v434_v20 }
  0x9b   : > { %v474_v25 = vmax.f32 %v435_v22, 0.0 }
  0x9e   : > { %v459_v51 = vpop.f32.mrf.mxu2 }
  0x9f   : > { %v460_v61 = vadd.f32 %v1569_v21, %v459_v51 }
  0xa0   : > { %v436_v23 = vpop.f32.mrf.mxu0 }
  0xa1   : > { %v437_v24 = vadd.f32 %v1569_v21, %v436_v23  ;;  %v484_v63 = vmax.f32 %v460_v61, 0.0 }
  0xa3   : > { %v475_v26 = vmax.f32 %v437_v24, 0.0 }
  0xa5   : > { %v490_v27 = vpack.c.bf16 %v475_v26, %v474_v25 }
  0xa6   : > { %v461_v55 = vpop.f32.mrf.mxu2 }
  0xa7   : > { %572 = vmatmul.bf16.vlgmr.msra.gmra.mxu1 %v490_v27  ;;  %v462_v62 = vadd.f32 %v1569_v21, %v461_v55 }
  0xa8   : > { %v439_v28 = vpop.f32.mrf.mxu0 }
  0xa9   : > { %v440_v29 = vadd.f32 %v1569_v21, %v439_v28  ;;  %v485_v0 = vmax.f32 %v462_v62, 0.0 }
  0xab   : > { %v476_v32 = vmax.f32 %v440_v29, 0.0  ;;  %v495_v1 = vpack.c.bf16 %v485_v0, %v484_v63 }
  0xae   : > { %v464_v60 = vpop.f32.mrf.mxu2 }
  0xaf   : > { %v465_v4 = vadd.f32 %v1569_v21, %v464_v60 }
  0xb0   : > { %v441_v30 = vpop.f32.mrf.mxu0 }
  0xb1   : > { %v442_v31 = vadd.f32 %v1569_v21, %v441_v30  ;;  %v486_v7 = vmax.f32 %v465_v4, 0.0 }
  0xb3   : > { %v477_v33 = vmax.f32 %v442_v31, 0.0 }
  0xb5   : > { %v491_v34 = vpack.c.bf16 %v477_v33, %v476_v32 }
  0xb6   : > { %v466_v2 = vpop.f32.mrf.mxu2 }
  0xb7   : > { %577 = vmatmul.bf16.gmra.mxu1 %v491_v34  ;;  %v467_v5 = vadd.f32 %v1569_v21, %v466_v2 }
  0xb8   : > { %v444_v35 = vpop.f32.mrf.mxu0 }
  0xb9   : > { %v445_v36 = vadd.f32 %v1569_v21, %v444_v35  ;;  %v487_v8 = vmax.f32 %v467_v5, 0.0 }
  0xbb   : > { %v478_v39 = vmax.f32 %v445_v36, 0.0  ;;  %v496_v9 = vpack.c.bf16 %v487_v8, %v486_v7 }
  0xbe   : > { %v469_v6 = vpop.f32.mrf.mxu2 }
  0xbf   : > { %v470_v12 = vadd.f32 %v1569_v21, %v469_v6 }
  0xc0   : > { %v446_v37 = vpop.f32.mrf.mxu0 }
  0xc1   : > { %v447_v38 = vadd.f32 %v1569_v21, %v446_v37  ;;  %v488_v14 = vmax.f32 %v470_v12, 0.0 }
  0xc3   : > { %v479_v40 = vmax.f32 %v447_v38, 0.0 }
  0xc5   : > { %v492_v41 = vpack.c.bf16 %v479_v40, %v478_v39 }
  0xc6   : > { %v471_v11 = vpop.f32.mrf.mxu2 }
  0xc7   : > { %582 = vmatmul.bf16.gmra.mxu1 %v492_v41  ;;  %v472_v13 = vadd.f32 %v1569_v21, %v471_v11 }
  0xc8   : > { %v449_v42 = vpop.f32.mrf.mxu0 }
  0xc9   : > { %v450_v43 = vadd.f32 %v1569_v21, %v449_v42  ;;  %v489_v15 = vmax.f32 %v472_v13, 0.0  ;;  %v1637_v13 = vld [vmem:[%s1782_s7 + $0x2] ss:$0 sm:$0xff] }
  0xcb   : > { %v480_v46 = vmax.f32 %v450_v43, 0.0  ;;  %v497_v16 = vpack.c.bf16 %v489_v15, %v488_v14 }
  0xd0   : > { %v451_v44 = vpop.f32.mrf.mxu0 }
  0xd1   : > { %v452_v45 = vadd.f32 %v1569_v21, %v451_v44 }
  0xd3   : > { %v481_v47 = vmax.f32 %v452_v45, 0.0 }
  0xd5   : > { %v493_v48 = vpack.c.bf16 %v481_v47, %v480_v46 }
  0xd7   : > { %587 = vmatmul.bf16.gmra.mxu1 %v493_v48  ;;  %v1421_v48 = vld [vmem:[%s1779_s4] sm:$0xff] }
  0xd8   : > { %v454_v50 = vpop.f32.mrf.mxu0  ;;  %818 = vmatpush.bf16.msrb.mxu1 %v1421_v48  ;;  %1440 = vmatpush.bf16.msra.mxu3 %v1421_v48 }
  0xd9   : > { %v455_v52 = vadd.f32 %v1569_v21, %v454_v50 }
  0xdb   : > { %v482_v56 = vmax.f32 %v455_v52, 0.0 }
  0xe0   : > { %v456_v53 = vpop.f32.mrf.mxu0 }
  0xe1   : > { %v457_v54 = vadd.f32 %v1569_v21, %v456_v53 }
  0xe3   : > { %v483_v57 = vmax.f32 %v457_v54, 0.0 }
  0xe5   : > { %v494_v58 = vpack.c.bf16 %v483_v57, %v482_v56 }
  0xe7   : > { %592 = vmatmul.bf16.gmra.mxu1 %v494_v58 }
  0xf7   : > { %597 = vmatmul.bf16.gmra.mxu1 %v495_v1 }
 0x107   : > { %602 = vmatmul.bf16.gmra.mxu1 %v496_v9 }
 0x117   : > { %607 = vmatmul.bf16.gmra.mxu1 %v497_v16 }
 0x124   : > { %v573_v17 = vpop.f32.mrf.mxu1 }
 0x125   : > { %v574_v20 = vadd.f32 %v1602_v18, %v573_v17 }
 0x127   : > { %v613_v23 = vmax.f32 %v574_v20, 0.0 }
 0x12c   : > { %v575_v22 = vpop.f32.mrf.mxu1 }
 0x12d   : > { %v576_v21 = vadd.f32 %v1602_v18, %v575_v22 }
 0x12f   : > { %v614_v24 = vmax.f32 %v576_v21, 0.0 }
 0x131   : > { %v629_v25 = vpack.c.bf16 %v614_v24, %v613_v23 }
 0x133   : > { %1315 = vmatmul.msk.bf16.vlgmr.msrb.gmra.mxu2 %vm400_vm0, %v629_v25 }
 0x134   : > { %v578_v26 = vpop.f32.mrf.mxu1 }
 0x135   : > { %v579_v27 = vadd.f32 %v1602_v18, %v578_v26 }
 0x137   : > { %v615_v30 = vmax.f32 %v579_v27, 0.0 }
 0x13c   : > { %v580_v28 = vpop.f32.mrf.mxu1 }
 0x13d   : > { %v581_v29 = vadd.f32 %v1602_v18, %v580_v28 }
 0x13f   : > { %v616_v31 = vmax.f32 %v581_v29, 0.0 }
 0x141   : > { %v630_v32 = vpack.c.bf16 %v616_v31, %v615_v30 }
 0x143   : > { %1316 = vmatmul.msk.bf16.gmra.mxu2 %vm400_vm0, %v630_v32 }
 0x144   : > { %v583_v33 = vpop.f32.mrf.mxu1 }
 0x145   : > { %v584_v34 = vadd.f32 %v1602_v18, %v583_v33 }
 0x147   : > { %v617_v37 = vmax.f32 %v584_v34, 0.0 }
 0x14c   : > { %v585_v35 = vpop.f32.mrf.mxu1 }
 0x14d   : > { %v586_v36 = vadd.f32 %v1602_v18, %v585_v35  ;;  %v1426_v35 = vld [vmem:[%s1780_s5 + $0x18] sm:$0xff] }
 0x14e   : > { %946 = vmatpush.bf16.msrb.mxu3 %v1426_v35 }
 0x14f   : > { %v618_v38 = vmax.f32 %v586_v36, 0.0 }
 0x151   : > { %v631_v39 = vpack.c.bf16 %v618_v38, %v617_v37 }
 0x153   : > { %1317 = vmatmul.msk.bf16.gmra.mxu2 %vm400_vm0, %v631_v39 }
 0x154   : > { %v588_v40 = vpop.f32.mrf.mxu1 }
 0x155   : > { %v589_v41 = vadd.f32 %v1602_v18, %v588_v40 }
 0x157   : > { %v619_v44 = vmax.f32 %v589_v41, 0.0 }
 0x15c   : > { %v590_v42 = vpop.f32.mrf.mxu1 }
 0x15d   : > { %v591_v43 = vadd.f32 %v1602_v18, %v590_v42 }
 0x15f   : > { %v620_v45 = vmax.f32 %v591_v43, 0.0  ;;  %v1425_v43 = vld [vmem:[%s1780_s5 + $0x10] sm:$0xff] }
 0x160   : > { %947 = vmatpush.bf16.msrb.mxu3 %v1425_v43 }
 0x161   : > { %v632_v46 = vpack.c.bf16 %v620_v45, %v619_v44 }
 0x163   : > { %1318 = vmatmul.msk.bf16.gmra.mxu2 %vm400_vm0, %v632_v46 }
 0x164   : > { %v593_v47 = vpop.f32.mrf.mxu1 }
 0x165   : > { %v594_v49 = vadd.f32 %v1602_v18, %v593_v47 }
 0x167   : > { %v621_v52 = vmax.f32 %v594_v49, 0.0 }
 0x16c   : > { %v595_v50 = vpop.f32.mrf.mxu1 }
 0x16d   : > { %v596_v51 = vadd.f32 %v1602_v18, %v595_v50 }
 0x16f   : > { %v622_v53 = vmax.f32 %v596_v51, 0.0 }
 0x171   : > { %v633_v54 = vpack.c.bf16 %v622_v53, %v621_v52 }
 0x173   : > { %1319 = vmatmul.msk.bf16.gmra.mxu2 %vm400_vm0, %v633_v54 }
 0x174   : > { %v598_v55 = vpop.f32.mrf.mxu1 }
 0x175   : > { %v599_v56 = vadd.f32 %v1602_v18, %v598_v55 }
 0x177   : > { %v623_v59 = vmax.f32 %v599_v56, 0.0 }
 0x17c   : > { %v600_v57 = vpop.f32.mrf.mxu1 }
 0x17d   : > { %v601_v58 = vadd.f32 %v1602_v18, %v600_v57  ;;  %v1424_v57 = vld [vmem:[%s1780_s5 + $0x8] sm:$0xff] }
 0x17e   : > { %948 = vmatpush.bf16.msrb.mxu3 %v1424_v57  ;;  %v1429_v57 = vld [vmem:[%s1781_s6 + $0x10] sm:$0xff] }
 0x17f   : > { %v624_v60 = vmax.f32 %v601_v58, 0.0 }
 0x181   : > { %v634_v61 = vpack.c.bf16 %v624_v60, %v623_v59 }
 0x183   : > { %1320 = vmatmul.msk.bf16.gmra.mxu2 %vm400_vm0, %v634_v61 }
 0x184   : > { %v603_v62 = vpop.f32.mrf.mxu1 }
 0x185   : > { %v604_v63 = vadd.f32 %v1602_v18, %v603_v62 }
 0x187   : > { %v625_v2 = vmax.f32 %v604_v63, 0.0 }
 0x18c   : > { %v605_v0 = vpop.f32.mrf.mxu1 }
 0x18d   : > { %v606_v1 = vadd.f32 %v1602_v18, %v605_v0 }
 0x18f   : > { %v626_v3 = vmax.f32 %v606_v1, 0.0  ;;  %v1423_v1 = vld [vmem:[%s1780_s5] sm:$0xff] }
 0x190   : > { %949 = vmatpush.bf16.msrb.mxu3 %v1423_v1  ;;  %v1428_v1 = vld [vmem:[%s1781_s6 + $0x8] sm:$0xff] }
 0x191   : > { %v635_v4 = vpack.c.bf16 %v626_v3, %v625_v2 }
 0x193   : > { %1321 = vmatmul.msk.bf16.gmra.mxu2 %vm400_vm0, %v635_v4 }
 0x194   : > { %v608_v5 = vpop.f32.mrf.mxu1 }
 0x195   : > { %v609_v6 = vadd.f32 %v1602_v18, %v608_v5 }
 0x197   : > { %v627_v9 = vmax.f32 %v609_v6, 0.0 }
 0x19c   : > { %v610_v7 = vpop.f32.mrf.mxu1 }
 0x19d   : > { %v611_v8 = vadd.f32 %v1602_v18, %v610_v7 }
 0x19f   : > { %v628_v10 = vmax.f32 %v611_v8, 0.0 }
 0x1a1   : > { %v636_v11 = vpack.c.bf16 %v628_v10, %v627_v9  ;;  %v1678_v10 = vld [vmem:[%s1782_s7 + $0x3] ss:$0 sm:$0xff] }
 0x1a3   : > { %1322 = vmatmul.msk.bf16.gmra.mxu2 %vm400_vm0, %v636_v11 }
 0x1b6   : > { %v704_v12 = vpop.f32.mrf.mxu2 }
 0x1b7   : > { %v705_v14 = vadd.f32 %v1637_v13, %v704_v12 }
 0x1b9   : > { %v744_v17 = vmax.f32 %v705_v14, 0.0 }
 0x1be   : > { %v706_v15 = vpop.f32.mrf.mxu2 }
 0x1bf   : > { %v707_v16 = vadd.f32 %v1637_v13, %v706_v15 }
 0x1c1   : > { %v745_v19 = vmax.f32 %v707_v16, 0.0 }
 0x1c3   : > { %v760_v18 = vpack.c.bf16 %v745_v19, %v744_v17 }
 0x1c5   : > { %1331 = vmatmul.msk.bf16.vlgmr.msrb.gmra.mxu1 %vm786_vm1, %v760_v18 }
 0x1c6   : > { %v709_v20 = vpop.f32.mrf.mxu2 }
 0x1c7   : > { %v710_v22 = vadd.f32 %v1637_v13, %v709_v20 }
 0x1c9   : > { %v746_v24 = vmax.f32 %v710_v22, 0.0 }
 0x1ce   : > { %v711_v21 = vpop.f32.mrf.mxu2 }
 0x1cf   : > { %v712_v23 = vadd.f32 %v1637_v13, %v711_v21 }
 0x1d1   : > { %v747_v25 = vmax.f32 %v712_v23, 0.0 }
 0x1d3   : > { %v761_v26 = vpack.c.bf16 %v747_v25, %v746_v24 }
 0x1d5   : > { %1332 = vmatmul.msk.bf16.gmra.mxu1 %vm786_vm1, %v761_v26 }
 0x1d6   : > { %v714_v27 = vpop.f32.mrf.mxu2 }
 0x1d7   : > { %v715_v28 = vadd.f32 %v1637_v13, %v714_v27 }
 0x1d9   : > { %v748_v31 = vmax.f32 %v715_v28, 0.0 }
 0x1de   : > { %v716_v29 = vpop.f32.mrf.mxu2 }
 0x1df   : > { %v717_v30 = vadd.f32 %v1637_v13, %v716_v29 }
 0x1e1   : > { %v749_v32 = vmax.f32 %v717_v30, 0.0 }
 0x1e3   : > { %v762_v33 = vpack.c.bf16 %v749_v32, %v748_v31  ;;  %v1434_v32 = vld [vmem:[%s1781_s6 + $0x38] sm:$0xff] }
 0x1e4   : > { %1081 = vmatpush.bf16.msrb.mxu0 %v1434_v32 }
 0x1e5   : > { %1333 = vmatmul.msk.bf16.gmra.mxu1 %vm786_vm1, %v762_v33 }
 0x1e6   : > { %v719_v34 = vpop.f32.mrf.mxu2 }
 0x1e7   : > { %v720_v36 = vadd.f32 %v1637_v13, %v719_v34 }
 0x1e9   : > { %v750_v39 = vmax.f32 %v720_v36, 0.0 }
 0x1ee   : > { %v721_v37 = vpop.f32.mrf.mxu2 }
 0x1ef   : > { %v722_v38 = vadd.f32 %v1637_v13, %v721_v37 }
 0x1f1   : > { %v751_v40 = vmax.f32 %v722_v38, 0.0 }
 0x1f3   : > { %v763_v41 = vpack.c.bf16 %v751_v40, %v750_v39  ;;  %v1433_v39 = vld [vmem:[%s1781_s6 + $0x30] sm:$0xff] }
 0x1f4   : > { %1082 = vmatpush.bf16.msrb.mxu0 %v1433_v39 }
 0x1f5   : > { %1334 = vmatmul.msk.bf16.vlgmr.msra.gmra.mxu3 %vm786_vm1, %v763_v41  ;;  %v1432_v41 = vld [vmem:[%s1781_s6 + $0x28] sm:$0xff] }
 0x1f6   : > { %v724_v42 = vpop.f32.mrf.mxu2 }
 0x1f7   : > { %v725_v44 = vadd.f32 %v1637_v13, %v724_v42 }
 0x1f8   : > { %1083 = vmatpush.bf16.msrb.mxu0 %v1432_v41 }
 0x1f9   : > { %v752_v47 = vmax.f32 %v725_v44, 0.0 }
 0x1fe   : > { %v726_v45 = vpop.f32.mrf.mxu2 }
 0x1ff   : > { %v727_v46 = vadd.f32 %v1637_v13, %v726_v45 }
 0x201   : > { %v753_v48 = vmax.f32 %v727_v46, 0.0 }
 0x203   : > { %v764_v49 = vpack.c.bf16 %v753_v48, %v752_v47  ;;  %v1431_v48 = vld [vmem:[%s1781_s6 + $0x20] sm:$0xff] }
 0x204   : > { %1084 = vmatpush.bf16.msrb.mxu0 %v1431_v48 }
 0x205   : > { %1335 = vmatmul.msk.bf16.gmra.mxu3 %vm786_vm1, %v764_v49 }
 0x206   : > { %v729_v50 = vpop.f32.mrf.mxu2 }
 0x207   : > { %v730_v51 = vadd.f32 %v1637_v13, %v729_v50 }
 0x209   : > { %v754_v54 = vmax.f32 %v730_v51, 0.0 }
 0x20e   : > { %v731_v52 = vpop.f32.mrf.mxu2 }
 0x20f   : > { %v732_v53 = vadd.f32 %v1637_v13, %v731_v52 }
 0x211   : > { %v755_v55 = vmax.f32 %v732_v53, 0.0 }
 0x213   : > { %v765_v56 = vpack.c.bf16 %v755_v55, %v754_v54 }
 0x215   : > { %1336 = vmatmul.msk.bf16.gmra.mxu3 %vm786_vm1, %v765_v56  ;;  %v1430_v56 = vld [vmem:[%s1781_s6 + $0x18] sm:$0xff] }
 0x216   : > { %v734_v58 = vpop.f32.mrf.mxu2  ;;  %1085 = vmatpush.bf16.msrb.mxu0 %v1430_v56 }
 0x217   : > { %v735_v59 = vadd.f32 %v1637_v13, %v734_v58 }
 0x219   : > { %v756_v62 = vmax.f32 %v735_v59, 0.0 }
 0x21a   : > { %1086 = vmatpush.bf16.msrb.mxu0 %v1429_v57 }
 0x21e   : > { %v736_v60 = vpop.f32.mrf.mxu2  ;;  %1087 = vmatpush.bf16.msrb.mxu0 %v1428_v1 }
 0x21f   : > { %v737_v61 = vadd.f32 %v1637_v13, %v736_v60 }
 0x221   : > { %v757_v63 = vmax.f32 %v737_v61, 0.0 }
 0x223   : > { %v766_v0 = vpack.c.bf16 %v757_v63, %v756_v62 }
 0x225   : > { %1337 = vmatmul.msk.bf16.gmra.mxu3 %vm786_vm1, %v766_v0 }
 0x226   : > { %v739_v2 = vpop.f32.mrf.mxu2 }
 0x227   : > { %v740_v3 = vadd.f32 %v1637_v13, %v739_v2 }
 0x229   : > { %v758_v6 = vmax.f32 %v740_v3, 0.0  ;;  %v1427_v3 = vld [vmem:[%s1781_s6] sm:$0xff] }
 0x22a   : > { %1088 = vmatpush.bf16.msrb.mxu0 %v1427_v3  ;;  %v1454_v3 = vld [vmem:[%s1782_s7 + $0x5] ss:$0 sm:$0xff] }
 0x22e   : > { %v741_v4 = vpop.f32.mrf.mxu2 }
 0x22f   : > { %v742_v5 = vadd.f32 %v1637_v13, %v741_v4 }
 0x231   : > { %v759_v7 = vmax.f32 %v742_v5, 0.0 }
 0x233   : > { %v767_v8 = vpack.c.bf16 %v759_v7, %v758_v6 }
 0x235   : > { %1338 = vmatmul.msk.bf16.gmra.mxu3 %vm786_vm1, %v767_v8 }
 0x242   : > { %v820_v9 = vpop.f32.mrf.mxu1 }
 0x243   : > { %v821_v11 = vadd.f32 %v1678_v10, %v820_v9 }
 0x245   : > { %v860_v15 = vmax.f32 %v821_v11, 0.0 }
 0x24a   : > { %v822_v12 = vpop.f32.mrf.mxu1 }
 0x24b   : > { %v823_v14 = vadd.f32 %v1678_v10, %v822_v12  ;;  %v1453_v12 = vld [vmem:[%s1782_s7 + $0x4] ss:$0 sm:$0xff] }
 0x24d   : > { %v861_v16 = vmax.f32 %v823_v14, 0.0 }
 0x24f   : > { %v876_v17 = vpack.c.bf16 %v861_v16, %v860_v15 }
 0x251   : > { %1355 = vmatmul.msk.bf16.vlgmr.msrb.gmra.mxu3 %vm400_vm0, %v876_v17 }
 0x252   : > { %v825_v13 = vpop.f32.mrf.mxu1 }
 0x253   : > { %v826_v19 = vadd.f32 %v1678_v10, %v825_v13 }
 0x255   : > { %v862_v22 = vmax.f32 %v826_v19, 0.0 }
 0x25a   : > { %v827_v18 = vpop.f32.mrf.mxu1 }
 0x25b   : > { %v828_v20 = vadd.f32 %v1678_v10, %v827_v18 }
 0x25d   : > { %v863_v21 = vmax.f32 %v828_v20, 0.0 }
 0x25f   : > { %v877_v23 = vpack.c.bf16 %v863_v21, %v862_v22 }
 0x261   : > { %1356 = vmatmul.msk.bf16.gmra.mxu3 %vm400_vm0, %v877_v23 }
 0x262   : > { %v830_v24 = vpop.f32.mrf.mxu1 }
 0x263   : > { %v831_v25 = vadd.f32 %v1678_v10, %v830_v24 }
 0x265   : > { %v864_v28 = vmax.f32 %v831_v25, 0.0 }
 0x26a   : > { %v832_v26 = vpop.f32.mrf.mxu1 }
 0x26b   : > { %v833_v27 = vadd.f32 %v1678_v10, %v832_v26 }
 0x26d   : > { %v865_v29 = vmax.f32 %v833_v27, 0.0 }
 0x26f   : > { %v878_v30 = vpack.c.bf16 %v865_v29, %v864_v28 }
 0x271   : > { %1357 = vmatmul.msk.bf16.gmra.mxu3 %vm400_vm0, %v878_v30 }
 0x278   : > { %v835_v31 = vpop.f32.mrf.mxu3 }
 0x279   : > { %v836_v33 = vadd.f32 %v1678_v10, %v835_v31 }
 0x27b   : > { %v866_v36 = vmax.f32 %v836_v33, 0.0 }
 0x280   : > { %v837_v34 = vpop.f32.mrf.mxu3 }
 0x281   : > { %v838_v35 = vadd.f32 %v1678_v10, %v837_v34 }
 0x283   : > { %v867_v37 = vmax.f32 %v838_v35, 0.0 }
 0x285   : > { %v879_v38 = vpack.c.bf16 %v867_v37, %v866_v36 }
 0x287   : > { %1358 = vmatmul.msk.bf16.gmra.mxu3 %vm400_vm0, %v879_v38 }
 0x288   : > { %v840_v40 = vpop.f32.mrf.mxu3 }
 0x289   : > { %v841_v42 = vadd.f32 %v1678_v10, %v840_v40 }
 0x28b   : > { %v868_v45 = vmax.f32 %v841_v42, 0.0 }
 0x290   : > { %v842_v43 = vpop.f32.mrf.mxu3 }
 0x291   : > { %v843_v44 = vadd.f32 %v1678_v10, %v842_v43 }
 0x293   : > { %v869_v46 = vmax.f32 %v843_v44, 0.0 }
 0x295   : > { %v880_v47 = vpack.c.bf16 %v869_v46, %v868_v45 }
 0x297   : > { %1359 = vmatmul.msk.bf16.gmra.mxu3 %vm400_vm0, %v880_v47 }
 0x298   : > { %v845_v49 = vpop.f32.mrf.mxu3 }
 0x299   : > { %v846_v50 = vadd.f32 %v1678_v10, %v845_v49 }
 0x29b   : > { %v870_v53 = vmax.f32 %v846_v50, 0.0 }
 0x2a0   : > { %v847_v51 = vpop.f32.mrf.mxu3 }
 0x2a1   : > { %v848_v52 = vadd.f32 %v1678_v10, %v847_v51 }
 0x2a3   : > { %v871_v54 = vmax.f32 %v848_v52, 0.0 }
 0x2a5   : > { %v881_v55 = vpack.c.bf16 %v871_v54, %v870_v53 }
 0x2a7   : > { %1360 = vmatmul.msk.bf16.gmra.mxu3 %vm400_vm0, %v881_v55 }
 0x2a8   : > { %v850_v58 = vpop.f32.mrf.mxu3 }
 0x2a9   : > { %v851_v59 = vadd.f32 %v1678_v10, %v850_v58 }
 0x2ab   : > { %v872_v62 = vmax.f32 %v851_v59, 0.0 }
 0x2b0   : > { %v852_v60 = vpop.f32.mrf.mxu3 }
 0x2b1   : > { %v853_v61 = vadd.f32 %v1678_v10, %v852_v60 }
 0x2b3   : > { %v873_v63 = vmax.f32 %v853_v61, 0.0 }
 0x2b5   : > { %v882_v0 = vpack.c.bf16 %v873_v63, %v872_v62 }
 0x2b7   : > { %1361 = vmatmul.msk.bf16.gmra.mxu3 %vm400_vm0, %v882_v0 }
 0x2b8   : > { %v855_v2 = vpop.f32.mrf.mxu3 }
 0x2b9   : > { %v856_v4 = vadd.f32 %v1678_v10, %v855_v2 }
 0x2bb   : > { %v874_v7 = vmax.f32 %v856_v4, 0.0 }
 0x2c0   : > { %v857_v5 = vpop.f32.mrf.mxu3 }
 0x2c1   : > { %v858_v6 = vadd.f32 %v1678_v10, %v857_v5 }
 0x2c3   : > { %v875_v8 = vmax.f32 %v858_v6, 0.0 }
 0x2c5   : > { %v883_v9 = vpack.c.bf16 %v875_v8, %v874_v7 }
 0x2c7   : > { %1362 = vmatmul.msk.bf16.gmra.mxu3 %vm400_vm0, %v883_v9 }
 0x2d4   : > { %v951_v11 = vpop.f32.mrf.mxu3 }
 0x2d5   : > { %v952_v14 = vadd.f32 %v1453_v12, %v951_v11 }
 0x2d7   : > { %v991_v17 = vmax.f32 %v952_v14, 0.0 }
 0x2dc   : > { %v953_v15 = vpop.f32.mrf.mxu3 }
 0x2dd   : > { %v954_v16 = vadd.f32 %v1453_v12, %v953_v15 }
 0x2df   : > { %v992_v13 = vmax.f32 %v954_v16, 0.0 }
 0x2e1   : > { %v1007_v19 = vpack.c.bf16 %v992_v13, %v991_v17 }
 0x2e3   : > { %1089 = vmatmul.bf16.vlgmr.msrb.gmra.mxu0 %v1007_v19 }
 0x2e4   : > { %v956_v18 = vpop.f32.mrf.mxu3 }
 0x2e5   : > { %v957_v20 = vadd.f32 %v1453_v12, %v956_v18 }
 0x2e7   : > { %v993_v21 = vmax.f32 %v957_v20, 0.0 }
 0x2ec   : > { %v958_v10 = vpop.f32.mrf.mxu3 }
 0x2ed   : > { %v959_v22 = vadd.f32 %v1453_v12, %v958_v10 }
 0x2ef   : > { %v994_v23 = vmax.f32 %v959_v22, 0.0 }
 0x2f1   : > { %v1008_v24 = vpack.c.bf16 %v994_v23, %v993_v21 }
 0x2f3   : > { %1094 = vmatmul.bf16.gmra.mxu0 %v1008_v24 }
 0x2f4   : > { %v961_v25 = vpop.f32.mrf.mxu3 }
 0x2f5   : > { %v962_v26 = vadd.f32 %v1453_v12, %v961_v25 }
 0x2f7   : > { %v995_v29 = vmax.f32 %v962_v26, 0.0 }
 0x2fc   : > { %v963_v27 = vpop.f32.mrf.mxu3 }
 0x2fd   : > { %v964_v28 = vadd.f32 %v1453_v12, %v963_v27 }
 0x2ff   : > { %v996_v30 = vmax.f32 %v964_v28, 0.0 }
 0x301   : > { %v1009_v31 = vpack.c.bf16 %v996_v30, %v995_v29 }
 0x303   : > { %1099 = vmatmul.bf16.gmra.mxu0 %v1009_v31 }
 0x30a   : > { %v966_v32 = vpop.f32.mrf.mxu3 }
 0x30b   : > { %v967_v33 = vadd.f32 %v1453_v12, %v966_v32 }
 0x30d   : > { %v997_v36 = vmax.f32 %v967_v33, 0.0 }
 0x312   : > { %v968_v34 = vpop.f32.mrf.mxu3 }
 0x313   : > { %v969_v35 = vadd.f32 %v1453_v12, %v968_v34 }
 0x315   : > { %v998_v37 = vmax.f32 %v969_v35, 0.0 }
 0x317   : > { %v1010_v38 = vpack.c.bf16 %v998_v37, %v997_v36 }
 0x319   : > { %1104 = vmatmul.bf16.gmra.mxu0 %v1010_v38 }
 0x31a   : > { %v971_v39 = vpop.f32.mrf.mxu3 }
 0x31b   : > { %v972_v40 = vadd.f32 %v1453_v12, %v971_v39 }
 0x31d   : > { %v999_v43 = vmax.f32 %v972_v40, 0.0 }
 0x322   : > { %v973_v41 = vpop.f32.mrf.mxu3 }
 0x323   : > { %v974_v42 = vadd.f32 %v1453_v12, %v973_v41 }
 0x325   : > { %v1000_v44 = vmax.f32 %v974_v42, 0.0 }
 0x327   : > { %v1011_v45 = vpack.c.bf16 %v1000_v44, %v999_v43 }
 0x329   : > { %1109 = vmatmul.bf16.gmra.mxu0 %v1011_v45 }
 0x32a   : > { %v976_v46 = vpop.f32.mrf.mxu3 }
 0x32b   : > { %v977_v47 = vadd.f32 %v1453_v12, %v976_v46 }
 0x32d   : > { %v1001_v50 = vmax.f32 %v977_v47, 0.0 }
 0x332   : > { %v978_v48 = vpop.f32.mrf.mxu3 }
 0x333   : > { %v979_v49 = vadd.f32 %v1453_v12, %v978_v48 }
 0x335   : > { %v1002_v51 = vmax.f32 %v979_v49, 0.0 }
 0x337   : > { %v1012_v52 = vpack.c.bf16 %v1002_v51, %v1001_v50 }
 0x339   : > { %1114 = vmatmul.bf16.gmra.mxu0 %v1012_v52 }
 0x33a   : > { %v981_v53 = vpop.f32.mrf.mxu3 }
 0x33b   : > { %v982_v54 = vadd.f32 %v1453_v12, %v981_v53 }
 0x33d   : > { %v1003_v57 = vmax.f32 %v982_v54, 0.0 }
 0x342   : > { %v983_v55 = vpop.f32.mrf.mxu3 }
 0x343   : > { %v984_v56 = vadd.f32 %v1453_v12, %v983_v55 }
 0x345   : > { %v1004_v58 = vmax.f32 %v984_v56, 0.0 }
 0x347   : > { %v1013_v59 = vpack.c.bf16 %v1004_v58, %v1003_v57 }
 0x349   : > { %1119 = vmatmul.bf16.gmra.mxu0 %v1013_v59 }
 0x34a   : > { %v986_v60 = vpop.f32.mrf.mxu3 }
 0x34b   : > { %v987_v61 = vadd.f32 %v1453_v12, %v986_v60 }
 0x34d   : > { %v1005_v0 = vmax.f32 %v987_v61, 0.0 }
 0x352   : > { %v988_v62 = vpop.f32.mrf.mxu3 }
 0x353   : > { %v989_v63 = vadd.f32 %v1453_v12, %v988_v62 }
 0x355   : > { %v1006_v1 = vmax.f32 %v989_v63, 0.0 }
 0x357   : > { %v1014_v2 = vpack.c.bf16 %v1006_v1, %v1005_v0 }
 0x359   : > { %1124 = vmatmul.bf16.gmra.mxu0 %v1014_v2 }
 0x360   : > { %v1090_v4 = vpop.f32.mrf.mxu0 }
 0x361   : > { %v1091_v5 = vadd.f32 %v1454_v3, %v1090_v4 }
 0x363   : > { %1130 = vst.msk [vmem:[%s1738_s28] sm:$0xff] %vm400_vm0, %v1091_v5 }
 0x368   : > { %v1092_v6 = vpop.f32.mrf.mxu0 }
 0x369   : > { %v1093_v7 = vadd.f32 %v1454_v3, %v1092_v6 }
 0x36b   : > { %1131 = vst.msk [vmem:[%s1738_s28 + $0x8] sm:$0xff] %vm400_vm0, %v1093_v7 }
 0x370   : > { %v1095_v8 = vpop.f32.mrf.mxu0 }
 0x371   : > { %v1096_v9 = vadd.f32 %v1454_v3, %v1095_v8 }
 0x373   : > { %1132 = vst.msk [vmem:[%s1738_s28 + $0x10] sm:$0xff] %vm400_vm0, %v1096_v9 }
 0x378   : > { %v1097_v11 = vpop.f32.mrf.mxu0 }
 0x379   : > { %v1098_v12 = vadd.f32 %v1454_v3, %v1097_v11 }
 0x37b   : > { %1133 = vst.msk [vmem:[%s1738_s28 + $0x18] sm:$0xff] %vm400_vm0, %v1098_v12 }
 0x380   : > { %v1100_v14 = vpop.f32.mrf.mxu0 }
 0x381   : > { %v1101_v15 = vadd.f32 %v1454_v3, %v1100_v14 }
 0x383   : > { %1134 = vst.msk [vmem:[%s1738_s28 + $0x20] sm:$0xff] %vm400_vm0, %v1101_v15 }
 0x388   : > { %v1102_v16 = vpop.f32.mrf.mxu0 }
 0x389   : > { %v1103_v17 = vadd.f32 %v1454_v3, %v1102_v16 }
 0x38b   : > { %1135 = vst.msk [vmem:[%s1738_s28 + $0x28] sm:$0xff] %vm400_vm0, %v1103_v17 }
 0x396   : > { %v1105_v13 = vpop.f32.mrf.mxu0 }
 0x397   : > { %v1106_v19 = vadd.f32 %v1454_v3, %v1105_v13 }
 0x399   : > { %1136 = vst.msk [vmem:[%s1738_s28 + $0x30] sm:$0xff] %vm400_vm0, %v1106_v19 }
 0x39e   : > { %v1107_v18 = vpop.f32.mrf.mxu0 }
 0x39f   : > { %v1108_v20 = vadd.f32 %v1454_v3, %v1107_v18 }
 0x3a1   : > { %1137 = vst.msk [vmem:[%s1738_s28 + $0x38] sm:$0xff] %vm400_vm0, %v1108_v20 }
 0x3a6   : > { %v1110_v10 = vpop.f32.mrf.mxu0 }
 0x3a7   : > { %v1111_v22 = vadd.f32 %v1454_v3, %v1110_v10 }
 0x3a9   : > { %1138 = vst.msk [vmem:[%s1738_s28 + $0x40] sm:$0xff] %vm400_vm0, %v1111_v22 }
 0x3ae   : > { %v1112_v21 = vpop.f32.mrf.mxu0 }
 0x3af   : > { %v1113_v23 = vadd.f32 %v1454_v3, %v1112_v21 }
 0x3b1   : > { %1139 = vst.msk [vmem:[%s1738_s28 + $0x48] sm:$0xff] %vm400_vm0, %v1113_v23 }
 0x3b6   : > { %v1115_v24 = vpop.f32.mrf.mxu0 }
 0x3b7   : > { %v1116_v25 = vadd.f32 %v1454_v3, %v1115_v24 }
 0x3b9   : > { %1140 = vst.msk [vmem:[%s1738_s28 + $0x50] sm:$0xff] %vm400_vm0, %v1116_v25 }
 0x3be   : > { %v1117_v26 = vpop.f32.mrf.mxu0 }
 0x3bf   : > { %v1118_v27 = vadd.f32 %v1454_v3, %v1117_v26 }
 0x3c1   : > { %1141 = vst.msk [vmem:[%s1738_s28 + $0x58] sm:$0xff] %vm400_vm0, %v1118_v27 }
 0x3c6   : > { %v1120_v28 = vpop.f32.mrf.mxu0 }
 0x3c7   : > { %v1121_v29 = vadd.f32 %v1454_v3, %v1120_v28 }
 0x3c9   : > { %1142 = vst.msk [vmem:[%s1738_s28 + $0x60] sm:$0xff] %vm400_vm0, %v1121_v29 }
 0x3ce   : > { %v1122_v30 = vpop.f32.mrf.mxu0 }
 0x3cf   : > { %v1123_v31 = vadd.f32 %v1454_v3, %v1122_v30 }
 0x3d1   : > { %1143 = vst.msk [vmem:[%s1738_s28 + $0x68] sm:$0xff] %vm400_vm0, %v1123_v31 }
 0x3d6   : > { %v1125_v32 = vpop.f32.mrf.mxu0 }
 0x3d7   : > { %v1126_v33 = vadd.f32 %v1454_v3, %v1125_v32 }
 0x3d9   : > { %1144 = vst.msk [vmem:[%s1738_s28 + $0x70] sm:$0xff] %vm400_vm0, %v1126_v33 }
 0x3de   : > { %v1127_v34 = vpop.f32.mrf.mxu0 }
 0x3df   : > { %v1128_v35 = vadd.f32 %v1454_v3, %v1127_v34 }
 0x3e1   : > { %1145 = vst.msk [vmem:[%s1738_s28 + $0x78] sm:$0xff] %vm400_vm0, %v1128_v35 }
 0x3e2 PF: > { %s18_s27 = sadd.s32 1, %s1461_s27  }
 0x3e3   : > { %p15_p4 = scmp.ge.s32.totalorder %s18_s27, 5  }
 0x3e5   :  { %17 = sbr.rel (!%p15_p4) target bundleno = 1 (0x1), region = 82 }

</bundles_post_ra>
